<compile_context>
chip_gen: v6e
topology: v6e:2x2x1
jax: 0.10.0
libtpu: 0.0.40
codegen_flags: <defaults>
</compile_context>

<pallas_src>
import math

import jax
import jax.numpy as jnp
from jax.experimental import pallas as pl
from jax.experimental.pallas import tpu as pltpu

# ---------------- model config (small, BERT-like) ----------------
B = 2            # batch
S = 8            # sequence length
H = 32           # hidden size
NH = 4           # num attention heads
HEAD = H // NH   # attention head size
I = 64           # intermediate size
G = B * NH       # merged (batch, head) dimension
EPS = 1e-12


def _layer_norm(x, gamma, beta):
    # TF-style layer norm (epsilon inside the sqrt), matches BERTLayerNorm
    u = jnp.mean(x, axis=-1, keepdims=True)
    s = jnp.mean((x - u) ** 2, axis=-1, keepdims=True)
    return gamma * ((x - u) / jnp.sqrt(s + EPS)) + beta


def _gelu(x):
    # gelu(x) = x * 0.5 * (1 + erf(x / sqrt(2)))   (exact, matches the PyTorch module)
    return x * 0.5 * (1.0 + jax.lax.erf(x / math.sqrt(2.0)))


def bert_layer_kernel(x_ref, mask_ref, wqkv_ref, wao_ref, wi_ref, wo_ref, slab_ref,
                      out_ref):
    f32 = jnp.float32
    bf16 = jnp.bfloat16

    x3 = x_ref[...]                               # (B, S, H) f32
    x2d = x3.reshape(B * S, H)                    # flattened rows (leading-dim merge)

    # ---- unpack the lane-dense bias / LayerNorm slab (one (3,128) f32 tile) --------
    slab = slab_ref[...]
    b_qkv = slab[0:1, 0:3 * H]                    # fused [bq|bk|bv] row, (1, 96)
    b_ao = slab[1:2, 0 * H:1 * H]
    g1 = slab[1:2, 1 * H:2 * H]
    be1 = slab[1:2, 2 * H:3 * H]
    b_o = slab[1:2, 3 * H:4 * H]
    g2 = slab[2:3, 0 * H:1 * H]
    be2 = slab[2:3, 1 * H:2 * H]
    b_i = slab[2:3, 2 * H:2 * H + I]              # (1, 64)

    # ---- fused QKV projection: single lane-dense MXU matmul -----------------------
    qkv = jnp.dot(x2d.astype(bf16), wqkv_ref[...],
                  preferred_element_type=f32) + b_qkv          # (B*S, 3H) f32
    qkv3 = qkv.reshape(B, S, 3 * H)                            # lane dim unchanged

    # Head views: static lane slices stacked along a leading (batch, head) axis.
    def head_view(base):
        parts = [qkv3[:, :, base + h * HEAD: base + (h + 1) * HEAD] for h in range(NH)]
        return jnp.stack(parts, axis=1).reshape(G, S, HEAD)    # (G, S, HEAD)

    q = head_view(0)
    k = head_view(H)
    v = head_view(2 * H)

    # ---- scaled dot-product attention for all (batch, head) pairs at once ---------
    scores = jnp.einsum('gsd,gtd->gst', q.astype(bf16), k.astype(bf16),
                        preferred_element_type=f32) * (1.0 / math.sqrt(HEAD))
    # hoisted additive mask: (B,1,S) -> (G,1,S), broadcast over query rows in the add
    mask_g = jnp.broadcast_to(mask_ref[...][:, None], (B, NH, 1, S)).reshape(G, 1, S)
    scores = scores + mask_g
    scores = scores - jnp.max(scores, axis=-1, keepdims=True)
    p = jnp.exp(scores)
    probs = p * pl.reciprocal(jnp.sum(p, axis=-1, keepdims=True), approx=True)
    # attention dropout: identity in eval mode
    ctx = jnp.einsum('gst,gtd->gsd', probs.astype(bf16), v.astype(bf16),
                     preferred_element_type=f32)               # (G, S, HEAD) f32

    # ---- BERTSelfOutput: one (B*S,H)@(H,H) dense + residual + LayerNorm -----------
    ctx4 = ctx.reshape(B, NH, S, HEAD)
    ctx_rows = jnp.concatenate([ctx4[:, h] for h in range(NH)], axis=-1)  # (B, S, H)
    ctx2d = ctx_rows.reshape(B * S, H)
    self_dense = jnp.dot(ctx2d.astype(bf16), wao_ref[...],
                         preferred_element_type=f32) + b_ao
    attn_out = _layer_norm(self_dense + x2d, g1, be1)          # (B*S, H) f32

    # ---- BERTIntermediate + BERTOutput on flattened (B*S, H) rows ------------------
    inter = jnp.dot(attn_out.astype(bf16), wi_ref[...],
                    preferred_element_type=f32) + b_i
    inter = _gelu(inter)
    ffn = jnp.dot(inter.astype(bf16), wo_ref[...],
                  preferred_element_type=f32) + b_o
    out_ref[...] = _layer_norm(ffn + attn_out, g2, be2)


def pack_params(params):
    """Repack plain (PyTorch-layout) params into lane-dense, bf16-MXU kernel operands."""
    (wq, bq, wk, bk, wv, bv, wao, bao, g1, b1, wi, bi, wo, bo, g2, b2) = params
    bf16 = jnp.bfloat16
    w_qkv = jnp.concatenate([wq, wk, wv], axis=1).astype(bf16)      # (H, 3H)
    # One (3, 128) f32 slab holding every bias / LayerNorm vector, lane-dense:
    #   row 0: [bq | bk | bv | pad]         (fused QKV bias, 96 lanes)
    #   row 1: [bao | gamma1 | beta1 | bo]  (4 * 32 = 128 lanes)
    #   row 2: [gamma2 | beta2 | bi]        (32 + 32 + 64 = 128 lanes)
    slab = jnp.zeros((3, 128), jnp.float32)
    slab = slab.at[0, 0:3 * H].set(jnp.concatenate([bq, bk, bv], axis=1)[0])
    slab = slab.at[1, 0 * H:1 * H].set(bao[0])
    slab = slab.at[1, 1 * H:2 * H].set(g1[0])
    slab = slab.at[1, 2 * H:3 * H].set(b1[0])
    slab = slab.at[1, 3 * H:4 * H].set(bo[0])
    slab = slab.at[2, 0 * H:1 * H].set(g2[0])
    slab = slab.at[2, 1 * H:2 * H].set(b2[0])
    slab = slab.at[2, 2 * H:2 * H + I].set(bi[0])
    return (w_qkv, wao.astype(bf16), wi.astype(bf16), wo.astype(bf16), slab)


def bert_layer(hidden_states, attention_mask, packed):
    """hidden_states: (B, S, H) f32; attention_mask: (B, 1, S) additive f32."""
    n_in = 2 + len(packed)
    flops = 2 * B * S * H * (3 * H + H) + 2 * B * S * H * 2 * I \
        + 2 * 2 * G * S * S * HEAD
    transcendentals = G * S * S + B * S * I + G * S + 2 * B * S
    bytes_accessed = (B * S * H * 4) + (B * 1 * S * 4) + (H * 3 * H * 2) \
        + (H * H * 2) + (H * I * 2) + (I * H * 2) + (3 * 128 * 4) + (B * S * H * 4)
    out2d = pl.pallas_call(
        bert_layer_kernel,
        out_shape=jax.ShapeDtypeStruct((B * S, H), jnp.float32),
        in_specs=[pl.BlockSpec(memory_space=pltpu.MemorySpace.VMEM) for _ in range(n_in)],
        out_specs=pl.BlockSpec(memory_space=pltpu.MemorySpace.VMEM),
        compiler_params=pltpu.CompilerParams(vmem_limit_bytes=32 * 1024 * 1024),
        cost_estimate=pl.CostEstimate(flops=flops, transcendentals=transcendentals,
                                      bytes_accessed=bytes_accessed),
    )(hidden_states, attention_mask, *packed)
    return out2d.reshape(B, S, H)


def make_params(key):
    ks = jax.random.split(key, 6)
    init = lambda k, shape: (0.02 * jax.random.normal(k, shape)).astype(jnp.float32)
    zeros = lambda shape: jnp.zeros(shape, jnp.float32)
    ones = lambda shape: jnp.ones(shape, jnp.float32)
    return (
        init(ks[0], (H, H)), zeros((1, H)),   # query
        init(ks[1], (H, H)), zeros((1, H)),   # key
        init(ks[2], (H, H)), zeros((1, H)),   # value
        init(ks[3], (H, H)), zeros((1, H)),   # attention output dense
        ones((1, H)), zeros((1, H)),          # LayerNorm 1 (gamma, beta)
        init(ks[4], (H, I)), zeros((1, I)),   # intermediate dense
        init(ks[5], (I, H)), zeros((1, H)),   # output dense
        ones((1, H)), zeros((1, H)),          # LayerNorm 2 (gamma, beta)
    )


def bert_layer_ref(x, mask, params):
    """Plain-JAX f32 reference mirroring the PyTorch module (dropout = identity)."""
    (wq, bq, wk, bk, wv, bv, wao, bao, g1, b1, wi, bi, wo, bo, g2, b2) = params
    q = x @ wq + bq
    k = x @ wk + bk
    v = x @ wv + bv
    split = lambda t: t.reshape(B, S, NH, HEAD).transpose(0, 2, 1, 3)  # (B, NH, S, HEAD)
    qh, kh, vh = split(q), split(k), split(v)
    scores = jnp.einsum("bhqd,bhkd->bhqk", qh, kh) / math.sqrt(HEAD)
    scores = scores + mask[:, None, :, :]            # (B, 1, 1, S) broadcast
    probs = jax.nn.softmax(scores, axis=-1)
    ctx = jnp.einsum("bhqk,bhkd->bhqd", probs, vh).transpose(0, 2, 1, 3).reshape(B, S, H)
    attn_out = _layer_norm(ctx @ wao + bao + x, g1, b1)
    inter = _gelu(attn_out @ wi + bi)
    return _layer_norm(inter @ wo + bo + attn_out, g2, b2)


if __name__ == "__main__":
    key = jax.random.PRNGKey(0)
    k_x, k_p = jax.random.split(key)

    hidden_states = jax.random.normal(k_x, (B, S, H), dtype=jnp.float32)
    # Additive attention mask: batch 0 sees all S tokens, batch 1 sees the first 5.
    valid_len = jnp.array([S, 5])
    pos = jnp.arange(S)[None, :]                                  # (1, S)
    attention_mask = jnp.where(pos < valid_len[:, None], 0.0, -10000.0)
    attention_mask = attention_mask.astype(jnp.float32).reshape(B, 1, S)

    params = make_params(k_p)
    packed = pack_params(params)

    out = bert_layer(hidden_states, attention_mask, packed)
    out = jax.block_until_ready(out)

    ref = bert_layer_ref(hidden_states, attention_mask, params)
    assert out.shape == (B, S, H)
    # Tolerance covers bf16 MXU operands (f32 accumulate) and the EUP-approximate
    # softmax reciprocal; all VPU math (LayerNorm, erf-GELU, residuals) is exact f32.
    assert jnp.allclose(out, ref, atol=1e-2, rtol=1e-2), "mismatch vs JAX reference"

    print("KERNEL_OK")
</pallas_src>

<mosaic_0001>
module attributes {stable_mosaic.version = 11 : i64} {
  func.func @bert_layer_kernel(%arg0: memref<2x8x32xf32, #tpu.memory_space<vmem>>, %arg1: memref<2x1x8xf32, #tpu.memory_space<vmem>>, %arg2: memref<32x96xbf16, #tpu.memory_space<vmem>>, %arg3: memref<32x32xbf16, #tpu.memory_space<vmem>>, %arg4: memref<32x64xbf16, #tpu.memory_space<vmem>>, %arg5: memref<64x32xbf16, #tpu.memory_space<vmem>>, %arg6: memref<3x128xf32, #tpu.memory_space<vmem>>, %arg7: memref<16x32xf32, #tpu.memory_space<vmem>>) attributes {dimension_semantics = [], scalar_prefetch = 0 : i64, scratch_operands = 0 : i64, tpu.core_type = #tpu.core_type<tc>} {
    %c0 = arith.constant 0 : index
    %c0_0 = arith.constant 0 : index
    %c0_1 = arith.constant 0 : index
    %0 = vector.load %arg0[%c0, %c0_0, %c0_1] : memref<2x8x32xf32, #tpu.memory_space<vmem>>, vector<2x8x32xf32>
    %1 = vector.shape_cast %0 : vector<2x8x32xf32> to vector<16x32xf32>
    %c0_2 = arith.constant 0 : index
    %c0_3 = arith.constant 0 : index
    %2 = vector.load %arg6[%c0_2, %c0_3] : memref<3x128xf32, #tpu.memory_space<vmem>>, vector<3x128xf32>
    %3 = vector.extract_strided_slice %2 {offsets = [0, 0], sizes = [1, 96], strides = [1, 1]} : vector<3x128xf32> to vector<1x96xf32>
    %4 = vector.extract_strided_slice %2 {offsets = [1, 0], sizes = [1, 32], strides = [1, 1]} : vector<3x128xf32> to vector<1x32xf32>
    %5 = vector.extract_strided_slice %2 {offsets = [1, 32], sizes = [1, 32], strides = [1, 1]} : vector<3x128xf32> to vector<1x32xf32>
    %6 = vector.extract_strided_slice %2 {offsets = [1, 64], sizes = [1, 32], strides = [1, 1]} : vector<3x128xf32> to vector<1x32xf32>
    %7 = vector.extract_strided_slice %2 {offsets = [1, 96], sizes = [1, 32], strides = [1, 1]} : vector<3x128xf32> to vector<1x32xf32>
    %8 = vector.extract_strided_slice %2 {offsets = [2, 0], sizes = [1, 32], strides = [1, 1]} : vector<3x128xf32> to vector<1x32xf32>
    %9 = vector.extract_strided_slice %2 {offsets = [2, 32], sizes = [1, 32], strides = [1, 1]} : vector<3x128xf32> to vector<1x32xf32>
    %10 = vector.extract_strided_slice %2 {offsets = [2, 64], sizes = [1, 64], strides = [1, 1]} : vector<3x128xf32> to vector<1x64xf32>
    %11 = arith.truncf %1 : vector<16x32xf32> to vector<16x32xbf16>
    %c0_4 = arith.constant 0 : index
    %c0_5 = arith.constant 0 : index
    %12 = vector.load %arg2[%c0_4, %c0_5] : memref<32x96xbf16, #tpu.memory_space<vmem>>, vector<32x96xbf16>
    %cst = arith.constant dense<0.000000e+00> : vector<16x96xf32>
    %13 = tpu.matmul %11, %12, %cst {dimension_numbers = #tpu.dot_dimension_numbers<[1], [0], [0], [1], [0, 0, 1, 1], [], []>} : vector<16x32xbf16>, vector<32x96xbf16>, vector<16x96xf32> -> vector<16x96xf32>
    %14 = vector.broadcast %3 : vector<1x96xf32> to vector<16x96xf32>
    %15 = arith.addf %13, %14 : vector<16x96xf32>
    %16 = vector.shape_cast %15 : vector<16x96xf32> to vector<2x8x96xf32>
    %17 = vector.extract_strided_slice %16 {offsets = [0, 0, 0], sizes = [2, 8, 8], strides = [1, 1, 1]} : vector<2x8x96xf32> to vector<2x8x8xf32>
    %18 = vector.extract_strided_slice %16 {offsets = [0, 0, 8], sizes = [2, 8, 8], strides = [1, 1, 1]} : vector<2x8x96xf32> to vector<2x8x8xf32>
    %19 = vector.extract_strided_slice %16 {offsets = [0, 0, 16], sizes = [2, 8, 8], strides = [1, 1, 1]} : vector<2x8x96xf32> to vector<2x8x8xf32>
    %20 = vector.extract_strided_slice %16 {offsets = [0, 0, 24], sizes = [2, 8, 8], strides = [1, 1, 1]} : vector<2x8x96xf32> to vector<2x8x8xf32>
    %21 = vector.shape_cast %17 : vector<2x8x8xf32> to vector<2x1x8x8xf32>
    %22 = vector.shape_cast %18 : vector<2x8x8xf32> to vector<2x1x8x8xf32>
    %23 = vector.shape_cast %19 : vector<2x8x8xf32> to vector<2x1x8x8xf32>
    %24 = vector.shape_cast %20 : vector<2x8x8xf32> to vector<2x1x8x8xf32>
    %25 = tpu.concatenate %21, %22, %23, %24 in 1 : vector<2x1x8x8xf32>, vector<2x1x8x8xf32>, vector<2x1x8x8xf32>, vector<2x1x8x8xf32> -> vector<2x4x8x8xf32>
    %26 = vector.shape_cast %25 : vector<2x4x8x8xf32> to vector<8x8x8xf32>
    %27 = vector.extract_strided_slice %16 {offsets = [0, 0, 32], sizes = [2, 8, 8], strides = [1, 1, 1]} : vector<2x8x96xf32> to vector<2x8x8xf32>
    %28 = vector.extract_strided_slice %16 {offsets = [0, 0, 40], sizes = [2, 8, 8], strides = [1, 1, 1]} : vector<2x8x96xf32> to vector<2x8x8xf32>
    %29 = vector.extract_strided_slice %16 {offsets = [0, 0, 48], sizes = [2, 8, 8], strides = [1, 1, 1]} : vector<2x8x96xf32> to vector<2x8x8xf32>
    %30 = vector.extract_strided_slice %16 {offsets = [0, 0, 56], sizes = [2, 8, 8], strides = [1, 1, 1]} : vector<2x8x96xf32> to vector<2x8x8xf32>
    %31 = vector.shape_cast %27 : vector<2x8x8xf32> to vector<2x1x8x8xf32>
    %32 = vector.shape_cast %28 : vector<2x8x8xf32> to vector<2x1x8x8xf32>
    %33 = vector.shape_cast %29 : vector<2x8x8xf32> to vector<2x1x8x8xf32>
    %34 = vector.shape_cast %30 : vector<2x8x8xf32> to vector<2x1x8x8xf32>
    %35 = tpu.concatenate %31, %32, %33, %34 in 1 : vector<2x1x8x8xf32>, vector<2x1x8x8xf32>, vector<2x1x8x8xf32>, vector<2x1x8x8xf32> -> vector<2x4x8x8xf32>
    %36 = vector.shape_cast %35 : vector<2x4x8x8xf32> to vector<8x8x8xf32>
    %37 = vector.extract_strided_slice %16 {offsets = [0, 0, 64], sizes = [2, 8, 8], strides = [1, 1, 1]} : vector<2x8x96xf32> to vector<2x8x8xf32>
    %38 = vector.extract_strided_slice %16 {offsets = [0, 0, 72], sizes = [2, 8, 8], strides = [1, 1, 1]} : vector<2x8x96xf32> to vector<2x8x8xf32>
    %39 = vector.extract_strided_slice %16 {offsets = [0, 0, 80], sizes = [2, 8, 8], strides = [1, 1, 1]} : vector<2x8x96xf32> to vector<2x8x8xf32>
    %40 = vector.extract_strided_slice %16 {offsets = [0, 0, 88], sizes = [2, 8, 8], strides = [1, 1, 1]} : vector<2x8x96xf32> to vector<2x8x8xf32>
    %41 = vector.shape_cast %37 : vector<2x8x8xf32> to vector<2x1x8x8xf32>
    %42 = vector.shape_cast %38 : vector<2x8x8xf32> to vector<2x1x8x8xf32>
    %43 = vector.shape_cast %39 : vector<2x8x8xf32> to vector<2x1x8x8xf32>
    %44 = vector.shape_cast %40 : vector<2x8x8xf32> to vector<2x1x8x8xf32>
    %45 = tpu.concatenate %41, %42, %43, %44 in 1 : vector<2x1x8x8xf32>, vector<2x1x8x8xf32>, vector<2x1x8x8xf32>, vector<2x1x8x8xf32> -> vector<2x4x8x8xf32>
    %46 = vector.shape_cast %45 : vector<2x4x8x8xf32> to vector<8x8x8xf32>
    %47 = arith.truncf %26 : vector<8x8x8xf32> to vector<8x8x8xbf16>
    %48 = arith.truncf %36 : vector<8x8x8xf32> to vector<8x8x8xbf16>
    "tpu.trace_start"() <{level = 10 : i32, message = "gsd,gtd->gst"}> : () -> ()
    %cst_6 = arith.constant dense<0.000000e+00> : vector<8x8x8xf32>
    %49 = tpu.matmul %47, %48, %cst_6 {dimension_numbers = #tpu.dot_dimension_numbers<[2], [2], [1], [1], [0, 0, 0, 1, 1, 1], [0], [0]>} : vector<8x8x8xbf16>, vector<8x8x8xbf16>, vector<8x8x8xf32> -> vector<8x8x8xf32>
    "tpu.trace_stop"() : () -> ()
    %cst_7 = arith.constant 0.353553385 : f32
    %50 = vector.broadcast %cst_7 : f32 to vector<8x8x8xf32>
    %51 = arith.mulf %49, %50 : vector<8x8x8xf32>
    %c0_8 = arith.constant 0 : index
    %c0_9 = arith.constant 0 : index
    %c0_10 = arith.constant 0 : index
    %52 = vector.load %arg1[%c0_8, %c0_9, %c0_10] : memref<2x1x8xf32, #tpu.memory_space<vmem>>, vector<2x1x8xf32>
    %53 = vector.shape_cast %52 : vector<2x1x8xf32> to vector<2x1x1x8xf32>
    %54 = vector.shape_cast %53 : vector<2x1x1x8xf32> to vector<2x1x1x8xf32>
    %55 = vector.broadcast %54 : vector<2x1x1x8xf32> to vector<2x4x1x8xf32>
    %56 = vector.shape_cast %55 : vector<2x4x1x8xf32> to vector<8x1x8xf32>
    %57 = vector.broadcast %56 : vector<8x1x8xf32> to vector<8x8x8xf32>
    %58 = arith.addf %51, %57 : vector<8x8x8xf32>
    %cst_11 = arith.constant dense<0xFF800000> : vector<8x8xf32>
    %59 = vector.multi_reduction <maximumf>, %58, %cst_11 [2] : vector<8x8x8xf32> to vector<8x8xf32>
    %60 = vector.shape_cast %59 : vector<8x8xf32> to vector<8x8x1xf32>
    %61 = vector.broadcast %60 : vector<8x8x1xf32> to vector<8x8x8xf32>
    %62 = arith.subf %58, %61 : vector<8x8x8xf32>
    %63 = math.exp %62 : vector<8x8x8xf32>
    %cst_12 = arith.constant dense<0.000000e+00> : vector<8x8xf32>
    %64 = vector.multi_reduction <add>, %63, %cst_12 [2] : vector<8x8x8xf32> to vector<8x8xf32>
    %65 = vector.shape_cast %64 : vector<8x8xf32> to vector<8x8x1xf32>
    %66 = tpu.reciprocal %65 {approx = true} : vector<8x8x1xf32> -> vector<8x8x1xf32>
    %67 = vector.broadcast %66 : vector<8x8x1xf32> to vector<8x8x8xf32>
    %68 = arith.mulf %63, %67 : vector<8x8x8xf32>
    %69 = arith.truncf %68 : vector<8x8x8xf32> to vector<8x8x8xbf16>
    %70 = arith.truncf %46 : vector<8x8x8xf32> to vector<8x8x8xbf16>
    "tpu.trace_start"() <{level = 10 : i32, message = "gst,gtd->gsd"}> : () -> ()
    %cst_13 = arith.constant dense<0.000000e+00> : vector<8x8x8xf32>
    %71 = tpu.matmul %69, %70, %cst_13 {dimension_numbers = #tpu.dot_dimension_numbers<[2], [1], [1], [2], [0, 0, 0, 1, 1, 2], [0], [0]>} : vector<8x8x8xbf16>, vector<8x8x8xbf16>, vector<8x8x8xf32> -> vector<8x8x8xf32>
    "tpu.trace_stop"() : () -> ()
    %72 = vector.shape_cast %71 : vector<8x8x8xf32> to vector<2x4x8x8xf32>
    %73 = vector.extract_strided_slice %72 {offsets = [0, 0, 0, 0], sizes = [2, 1, 8, 8], strides = [1, 1, 1, 1]} : vector<2x4x8x8xf32> to vector<2x1x8x8xf32>
    %74 = vector.shape_cast %73 : vector<2x1x8x8xf32> to vector<2x8x8xf32>
    %75 = vector.extract_strided_slice %72 {offsets = [0, 1, 0, 0], sizes = [2, 1, 8, 8], strides = [1, 1, 1, 1]} : vector<2x4x8x8xf32> to vector<2x1x8x8xf32>
    %76 = vector.shape_cast %75 : vector<2x1x8x8xf32> to vector<2x8x8xf32>
    %77 = vector.extract_strided_slice %72 {offsets = [0, 2, 0, 0], sizes = [2, 1, 8, 8], strides = [1, 1, 1, 1]} : vector<2x4x8x8xf32> to vector<2x1x8x8xf32>
    %78 = vector.shape_cast %77 : vector<2x1x8x8xf32> to vector<2x8x8xf32>
    %79 = vector.extract_strided_slice %72 {offsets = [0, 3, 0, 0], sizes = [2, 1, 8, 8], strides = [1, 1, 1, 1]} : vector<2x4x8x8xf32> to vector<2x1x8x8xf32>
    %80 = vector.shape_cast %79 : vector<2x1x8x8xf32> to vector<2x8x8xf32>
    %81 = tpu.concatenate %74, %76, %78, %80 in 2 : vector<2x8x8xf32>, vector<2x8x8xf32>, vector<2x8x8xf32>, vector<2x8x8xf32> -> vector<2x8x32xf32>
    %82 = vector.shape_cast %81 : vector<2x8x32xf32> to vector<16x32xf32>
    %83 = arith.truncf %82 : vector<16x32xf32> to vector<16x32xbf16>
    %c0_14 = arith.constant 0 : index
    %c0_15 = arith.constant 0 : index
    %84 = vector.load %arg3[%c0_14, %c0_15] : memref<32x32xbf16, #tpu.memory_space<vmem>>, vector<32x32xbf16>
    %cst_16 = arith.constant dense<0.000000e+00> : vector<16x32xf32>
    %85 = tpu.matmul %83, %84, %cst_16 {dimension_numbers = #tpu.dot_dimension_numbers<[1], [0], [0], [1], [0, 0, 1, 1], [], []>} : vector<16x32xbf16>, vector<32x32xbf16>, vector<16x32xf32> -> vector<16x32xf32>
    %86 = vector.broadcast %4 : vector<1x32xf32> to vector<16x32xf32>
    %87 = arith.addf %85, %86 : vector<16x32xf32>
    %88 = arith.addf %87, %1 : vector<16x32xf32>
    %cst_17 = arith.constant dense<0.000000e+00> : vector<16xf32>
    %89 = vector.multi_reduction <add>, %88, %cst_17 [1] : vector<16x32xf32> to vector<16xf32>
    %90 = vector.shape_cast %89 : vector<16xf32> to vector<16x1xf32>
    %cst_18 = arith.constant 3.200000e+01 : f32
    %91 = vector.broadcast %cst_18 : f32 to vector<16x1xf32>
    %92 = arith.divf %90, %91 : vector<16x1xf32>
    %93 = vector.broadcast %92 : vector<16x1xf32> to vector<16x32xf32>
    %94 = arith.subf %88, %93 : vector<16x32xf32>
    %95 = arith.mulf %94, %94 : vector<16x32xf32>
    %cst_19 = arith.constant dense<0.000000e+00> : vector<16xf32>
    %96 = vector.multi_reduction <add>, %95, %cst_19 [1] : vector<16x32xf32> to vector<16xf32>
    %97 = vector.shape_cast %96 : vector<16xf32> to vector<16x1xf32>
    %cst_20 = arith.constant 3.200000e+01 : f32
    %98 = vector.broadcast %cst_20 : f32 to vector<16x1xf32>
    %99 = arith.divf %97, %98 : vector<16x1xf32>
    %100 = vector.broadcast %92 : vector<16x1xf32> to vector<16x32xf32>
    %101 = arith.subf %88, %100 : vector<16x32xf32>
    %cst_21 = arith.constant 9.99999996E-13 : f32
    %102 = vector.broadcast %cst_21 : f32 to vector<16x1xf32>
    %103 = arith.addf %99, %102 : vector<16x1xf32>
    %104 = math.sqrt %103 : vector<16x1xf32>
    %105 = vector.broadcast %104 : vector<16x1xf32> to vector<16x32xf32>
    %106 = arith.divf %101, %105 : vector<16x32xf32>
    %107 = vector.broadcast %5 : vector<1x32xf32> to vector<16x32xf32>
    %108 = arith.mulf %107, %106 : vector<16x32xf32>
    %109 = vector.broadcast %6 : vector<1x32xf32> to vector<16x32xf32>
    %110 = arith.addf %108, %109 : vector<16x32xf32>
    %111 = arith.truncf %110 : vector<16x32xf32> to vector<16x32xbf16>
    %c0_22 = arith.constant 0 : index
    %c0_23 = arith.constant 0 : index
    %112 = vector.load %arg4[%c0_22, %c0_23] : memref<32x64xbf16, #tpu.memory_space<vmem>>, vector<32x64xbf16>
    %cst_24 = arith.constant dense<0.000000e+00> : vector<16x64xf32>
    %113 = tpu.matmul %111, %112, %cst_24 {dimension_numbers = #tpu.dot_dimension_numbers<[1], [0], [0], [1], [0, 0, 1, 1], [], []>} : vector<16x32xbf16>, vector<32x64xbf16>, vector<16x64xf32> -> vector<16x64xf32>
    %114 = vector.broadcast %10 : vector<1x64xf32> to vector<16x64xf32>
    %115 = arith.addf %113, %114 : vector<16x64xf32>
    %cst_25 = arith.constant 5.000000e-01 : f32
    %116 = vector.broadcast %cst_25 : f32 to vector<16x64xf32>
    %117 = arith.mulf %115, %116 : vector<16x64xf32>
    %cst_26 = arith.constant 1.41421354 : f32
    %118 = vector.broadcast %cst_26 : f32 to vector<16x64xf32>
    %119 = arith.divf %115, %118 : vector<16x64xf32>
    %120 = math.erf %119 : vector<16x64xf32>
    %cst_27 = arith.constant 1.000000e+00 : f32
    %121 = vector.broadcast %cst_27 : f32 to vector<16x64xf32>
    %122 = arith.addf %121, %120 : vector<16x64xf32>
    %123 = arith.mulf %117, %122 : vector<16x64xf32>
    %124 = arith.truncf %123 : vector<16x64xf32> to vector<16x64xbf16>
    %c0_28 = arith.constant 0 : index
    %c0_29 = arith.constant 0 : index
    %125 = vector.load %arg5[%c0_28, %c0_29] : memref<64x32xbf16, #tpu.memory_space<vmem>>, vector<64x32xbf16>
    %cst_30 = arith.constant dense<0.000000e+00> : vector<16x32xf32>
    %126 = tpu.matmul %124, %125, %cst_30 {dimension_numbers = #tpu.dot_dimension_numbers<[1], [0], [0], [1], [0, 0, 1, 1], [], []>} : vector<16x64xbf16>, vector<64x32xbf16>, vector<16x32xf32> -> vector<16x32xf32>
    %127 = vector.broadcast %7 : vector<1x32xf32> to vector<16x32xf32>
    %128 = arith.addf %126, %127 : vector<16x32xf32>
    %129 = arith.addf %128, %110 : vector<16x32xf32>
    %cst_31 = arith.constant dense<0.000000e+00> : vector<16xf32>
    %130 = vector.multi_reduction <add>, %129, %cst_31 [1] : vector<16x32xf32> to vector<16xf32>
    %131 = vector.shape_cast %130 : vector<16xf32> to vector<16x1xf32>
    %cst_32 = arith.constant 3.200000e+01 : f32
    %132 = vector.broadcast %cst_32 : f32 to vector<16x1xf32>
    %133 = arith.divf %131, %132 : vector<16x1xf32>
    %134 = vector.broadcast %133 : vector<16x1xf32> to vector<16x32xf32>
    %135 = arith.subf %129, %134 : vector<16x32xf32>
    %136 = arith.mulf %135, %135 : vector<16x32xf32>
    %cst_33 = arith.constant dense<0.000000e+00> : vector<16xf32>
    %137 = vector.multi_reduction <add>, %136, %cst_33 [1] : vector<16x32xf32> to vector<16xf32>
    %138 = vector.shape_cast %137 : vector<16xf32> to vector<16x1xf32>
    %cst_34 = arith.constant 3.200000e+01 : f32
    %139 = vector.broadcast %cst_34 : f32 to vector<16x1xf32>
    %140 = arith.divf %138, %139 : vector<16x1xf32>
    %141 = vector.broadcast %133 : vector<16x1xf32> to vector<16x32xf32>
    %142 = arith.subf %129, %141 : vector<16x32xf32>
    %cst_35 = arith.constant 9.99999996E-13 : f32
    %143 = vector.broadcast %cst_35 : f32 to vector<16x1xf32>
    %144 = arith.addf %140, %143 : vector<16x1xf32>
    %145 = math.sqrt %144 : vector<16x1xf32>
    %146 = vector.broadcast %145 : vector<16x1xf32> to vector<16x32xf32>
    %147 = arith.divf %142, %146 : vector<16x32xf32>
    %148 = vector.broadcast %8 : vector<1x32xf32> to vector<16x32xf32>
    %149 = arith.mulf %148, %147 : vector<16x32xf32>
    %150 = vector.broadcast %9 : vector<1x32xf32> to vector<16x32xf32>
    %151 = arith.addf %149, %150 : vector<16x32xf32>
    %c0_36 = arith.constant 0 : index
    %c0_37 = arith.constant 0 : index
    %152 = vector.load %arg7[%c0_36, %c0_37] : memref<16x32xf32, #tpu.memory_space<vmem>>, vector<16x32xf32>
    tpu.vector_store %arg7[%c0_36, %c0_37], %151 {strides = array<i32>} : memref<16x32xf32, #tpu.memory_space<vmem>>, vector<16x32xf32>,
    return
  }
}

</mosaic_0001>

<bundles_post_ra>
// kernel: tpu_custom_call.1
= control target key start
LH: loop header
LB: loop body
LE: loop exit
PB: predicated region body
PF: predicated region fallthrough
CT: control target
= control target key end

     0   :  { %12 = vsyncpa [#allocation3], 0  ;;  %s2196_s0 = inlined_call_operand.vmem [shape: f32[2,8,32], index: 0, kind: input, shape index: {}]   ;;  %s2197_s1 = inlined_call_operand.hbm [shape: f32[2,1,8], index: 1, kind: input, shape index: {}]   ;;  %s2198_s2 = inlined_call_operand.vmem [shape: bf16[32,96], index: 2, kind: input, shape index: {}]   ;;  %s2199_s3 = inlined_call_operand.vmem [shape: bf16[32,32], index: 3, kind: input, shape index: {}]   ;;  %s2200_s4 = inlined_call_operand.hbm [shape: bf16[32,64], index: 4, kind: input, shape index: {}]   ;;  %s2201_s5 = inlined_call_operand.vmem [shape: bf16[64,32], index: 5, kind: input, shape index: {}]   ;;  %s2202_s6 = inlined_call_operand.vmem [shape: f32[3,128], index: 6, kind: input, shape index: {}]   ;;  %s2203_s7 = inlined_call_operand.hbm [shape: f32[16,32], index: 7, kind: output, shape index: {}]  }
   0x1   :  { %13 = vsyncpa [#allocation6], 0 }
   0x2   :  { %14 = vsyncpa [#allocation4], 0  ;;  %s1824_s24 = smov [#allocation2]  }
   0x3   :  { %s22_s25 = sshll.u32 %s1824_s24, 4  ;;  %s23_s25 = int_to_ptr.vmem [resolvable:$true] %s22_s25 }
   0x4   :  { %s1766_s26 = scalar_lea.vmem %s23_s25, 32  ;;  %p1771_p1 = scmp.lt.s32.totalorder %s23_s25, %s23_s25 }
   0x5   :  { %p1767_p0 = scmp.ne.s32.totalorder %s23_s25, %s1766_s26  ;;  %p1772_p2 = scmp.lt.s32.totalorder %s1766_s26, %s1766_s26 }
   0x7   :  { %p1773_p3 = por %p1772_p2, %p1771_p1 }
   0x9   :  { %p1774_p4 = pnand %p1773_p3, %p1767_p0 }
   0xb   :  { %1777 = shalt.err (!%p1774_p4)
}
   0xc   :  { %s1825_s27 = smov 16   ;;  %s1826_s28 = smov 1  }
   0xd   :  { %28 = dma.hbm_to_vmem [thread:$0]  %s2197_s1, 32, %s23_s25, [#allocation3], %s1825_s27, %s1825_s27, %s1826_s28  }
   0xe   :  { %s1827_s8 = smov [#allocation5]  }
   0xf   :  { %s38_s9 = sshll.u32 %s1827_s8, 4  ;;  %s39_s9 = int_to_ptr.vmem [resolvable:$true] %s38_s9 }
  0x10   :  { %s1786_s10 = scalar_lea.vmem %s39_s9, 256  ;;  %p1791_p6 = scmp.lt.s32.totalorder %s39_s9, %s39_s9 }
  0x11   :  { %p1787_p5 = scmp.ne.s32.totalorder %s39_s9, %s1786_s10  ;;  %p1792_p7 = scmp.lt.s32.totalorder %s1786_s10, %s1786_s10 }
  0x13   :  { %p1793_p8 = por %p1792_p7, %p1791_p6 }
  0x15   :  { %p1794_p9 = pnand %p1793_p8, %p1787_p5 }
  0x17   :  { %1797 = shalt.err (!%p1794_p9)
}
  0x18   :  { %s1828_s11 = smov 64   ;;  %s1829_s12 = smov 4  }
  0x19   :  { %44 = dma.hbm_to_vmem [thread:$0]  %s2200_s4, 256, %s39_s9, [#allocation6], %s1828_s11, %s1828_s11, %s1829_s12  }
  0x1a   :  { %1818 = dma.done.wait [#allocation3], 32  }
  0x1b   :  { %1819 = vsyncadd [#allocation3], 4294967264 }
  0x1c   :  { %1820 = dma.done.wait [#allocation6], 256  }
  0x1d   :  { %1821 = vsyncadd [#allocation6], 4294967040  ;;  %v1830_v0 = vmov 0.0   ;;  %vm1831_vm0 = vmmov 0   ;;  %v1696_v1 = vld [vmem:[%s2198_s2 + $0x8] sm:$0xff]   ;;  %v1697_v2 = vld [vmem:[%s2198_s2] sm:$0xff]   ;;  %v64_v6 = vlaneseq }
  0x1e   :  { %1532 = vmatprep.subr.bf16.mxu0 %v1830_v0  ;;  %1536 = vmatprep.mubr.msk.bf16.mxu0 %vm1831_vm0, %v1830_v0  ;;  %v1906_v3 = vld [vmem:[%s2196_s0] sm:$0xff]  ;;  %v1911_v4 = vld [vmem:[%s2196_s0 + $0x8] sm:$0xff]  ;;  %vm80_vm1 = vcmask 261120   ;;  %s1832_s21 = smov 104   ;;  %s1833_s22 = smov 120   ;;  %vm156_vm2 = vcmask 64512  }
  0x1f   :  { %1540 = vmatprep.subr.bf16.mxu1 %v1830_v0  ;;  %1542 = vmatprep.mubr.msk.bf16.mxu1 %vm1831_vm0, %v1830_v0  ;;  %v59_v5 = vpack.c.bf16 %v1911_v4, %v1906_v3  ;;  %v1920_v7 = vshrl.u32 %v64_v6, 7  ;;  %v1926_v9 = vld [vmem:[%s2202_s6] sm:$0x7]  ;;  %s1834_s23 = smov 112   ;;  %s1835_s6 = smov 96   ;;  %vm677_vm3 = vcmask 1043456  }
  0x20   :  { %1533 = vmatpush3.bf16.msra.mxu0 %v1696_v1  ;;  %v1465_v50 = vld [vmem:[#allocation2] ss:$0 sm:$0xff]  ;;  %s1836_s29 = smov 8   ;;  %vm1083_vm4 = vcmask 130048   ;;  %vm1086_vm5 = vcmask 195584   ;;  %vm1332_vm10 = vcmask 523264  }
  0x21   :  { %1534 = vmatprep.subr.bf16.mxu0 %v1830_v0  ;;  %v66_v8 = vsub.s32 0, %v1920_v7 }
  0x23   :  { %v67_v10 = vrot.slane %v1926_v9, %v66_v8 }
  0x24   :  { %1535 = vmatpush3.bf16.msra.mxu0 %v1697_v2 }
  0x25   :  { %1546 = vmatprep.subr.bf16.mxu0 %v1830_v0 }
  0x27   :  { %1537 = vmatmul.mubr.msk.bf16.vlgmr.msra.gmra.mxu0 %vm80_vm1, %v59_v5 }
  0x28   :  { %1548 = vmatprep.mubr.msk.bf16.mxu0 %vm1831_vm0, %v1830_v0 }
  0xe7   :  { %v118_v11 = vpop.f32.mrf.mxu0 }
  0xe8   :  { %v119_v12 = vadd.f32 %v118_v11, %v67_v10 }
  0xe9   :  { %v1538_v13 = vpop.f32.mrf.mxu0 }
  0xea   :  { %139 = vrot.lane.b32.xlu1 %v119_v12, %s1832_s21  ;;  %127 = vrot.lane.b32.xlu0 %v119_v12, %s1833_s22  ;;  %v145_v17 = vpack.c.bf16 %v119_v12, %v119_v12 }
  0xeb   :  { %v121_v14 = vpop.f32.mrf.mxu0 }
  0xec   :  { %v122_v15 = vadd.f32 %v121_v14, %v67_v10 }
  0xed   :  { %v1539_v16 = vpop.f32.mrf.mxu0 }
  0xee   :  { %133 = vrot.lane.b32.xlu0 %v119_v12, %s1834_s23  ;;  %129 = vrot.lane.b32.xlu1 %v122_v15, %s1833_s22  ;;  %v1944_v27 = vpack.c.bf16 %v122_v15, %v122_v15 }
  0xf2   :  { %135 = vrot.lane.b32.xlu0 %v122_v15, %s1834_s23  ;;  %141 = vrot.lane.b32.xlu1 %v122_v15, %s1832_s21 }
  0xf6   :  { %154 = vrot.lane.b32.xlu0 %v145_v17, %s1835_s6 }
 0x15c   :  { %v140_v18 = vpop.permute.xlu1 %139  ;;  %v128_v19 = vpop.permute.xlu0 %127 }
 0x15d   :  { %v1930_v20 = vpack.c.bf16 %v128_v19, %v128_v19  ;;  %v1934_v23 = vpack.c.bf16 %v140_v18, %v140_v18  ;;  %v1466_v18 = vld [vmem:[#allocation2 + $0x1] ss:$0 sm:$0xff] }
 0x15f   :  { %204 = vrot.lane.b32.xlu1 %v1930_v20, %s1835_s6 }
 0x160   :  { %v134_v21 = vpop.permute.xlu0 %133  ;;  %v130_v22 = vpop.permute.xlu1 %129 }
 0x161   :  { %v1936_v24 = vpack.c.bf16 %v134_v21, %v134_v21  ;;  %v1942_v26 = vpack.c.bf16 %v130_v22, %v130_v22 }
 0x163   :  { %253 = vrot.lane.b32.xlu0 %v1936_v24, %s1835_s6  ;;  %302 = vrot.lane.b32.xlu1 %v1934_v23, %s1835_s6 }
 0x164   :  { %v136_v25 = vpop.permute.xlu0 %135  ;;  %v142_v28 = vpop.permute.xlu1 %141 }
 0x165   :  { %v1950_v30 = vpack.c.bf16 %v136_v25, %v136_v25  ;;  %v1952_v31 = vpack.c.bf16 %v142_v28, %v142_v28 }
 0x167   :  { %400 = vrot.lane.b32.xlu1 %v1942_v26, %s1835_s6  ;;  %351 = vrot.lane.b32.xlu0 %v1944_v27, %s1835_s6 }
 0x168   :  { %v155_v29 = vpop.permute.xlu0 %154 }
 0x169   :  { %v161_v32 = vsel %vm156_vm2, %v155_v29, 0 }
 0x16a   :  { %1541 = vmatpush3.bf16.xpose.msra.mxu1 %v161_v32 }
 0x16b   :  { %498 = vrot.lane.b32.xlu1 %v1952_v31, %s1835_s6  ;;  %449 = vrot.lane.b32.xlu0 %v1950_v30, %s1835_s6 }
 0x16c   :  { %1552 = vmatprep.subr.bf16.mxu1 %v1830_v0 }
 0x16f   :  { %672 = vrot.lane.b32.xlu1 %v145_v17, %s1828_s11 }
 0x171   :  { %1543 = vmatmul.mubr.msk.bf16.vlgmr.msra.gmra.mxu1 %vm156_vm2, %v145_v17 }
 0x172   :  { %1554 = vmatprep.mubr.msk.bf16.mxu1 %vm1831_vm0, %v1830_v0 }
 0x1d1   :  { %v205_v33 = vpop.permute.xlu1 %204 }
 0x1d2   :  { %v210_v34 = vsel %vm156_vm2, %v205_v33, 0 }
 0x1d3   :  { %1547 = vmatpush3.bf16.xpose.msra.mxu0 %v210_v34 }
 0x1d4   :  { %1558 = vmatprep.subr.bf16.mxu0 %v1830_v0 }
 0x1d5   :  { %v254_v35 = vpop.permute.xlu0 %253  ;;  %v303_v37 = vpop.permute.xlu1 %302 }
 0x1d6   :  { %v259_v36 = vsel %vm156_vm2, %v254_v35, 0  ;;  %v308_v38 = vsel %vm156_vm2, %v303_v37, 0 }
 0x1d7   :  { %1553 = vmatpush3.bf16.xpose.msra.mxu1 %v259_v36 }
 0x1d8   :  { %1564 = vmatprep.subr.bf16.mxu1 %v1830_v0 }
 0x1d9   :  { %v352_v39 = vpop.permute.xlu0 %351  ;;  %v401_v41 = vpop.permute.xlu1 %400 }
 0x1da   :  { %1549 = vmatmul.mubr.msk.bf16.vlgmr.msra.gmra.mxu0 %vm156_vm2, %v1930_v20  ;;  %v357_v40 = vsel %vm156_vm2, %v352_v39, 0  ;;  %v406_v42 = vsel %vm156_vm2, %v401_v41, 0 }
 0x1db   :  { %1559 = vmatpush3.bf16.xpose.msra.mxu0 %v308_v38  ;;  %1560 = vmatprep.mubr.msk.bf16.mxu0 %vm1831_vm0, %v1830_v0 }
 0x1dc   :  { %1570 = vmatprep.subr.bf16.mxu0 %v1830_v0 }
 0x1dd   :  { %v450_v43 = vpop.permute.xlu0 %449  ;;  %v499_v44 = vpop.permute.xlu1 %498 }
 0x1de   :  { %1555 = vmatmul.mubr.msk.bf16.vlgmr.msra.gmra.mxu1 %vm156_vm2, %v1936_v24  ;;  %v455_v45 = vsel %vm156_vm2, %v450_v43, 0  ;;  %v504_v46 = vsel %vm156_vm2, %v499_v44, 0 }
 0x1df   :  { %1565 = vmatpush3.bf16.xpose.msra.mxu1 %v357_v40  ;;  %1566 = vmatprep.mubr.msk.bf16.mxu1 %vm1831_vm0, %v1830_v0 }
 0x1e0   :  { %1576 = vmatprep.subr.bf16.mxu1 %v1830_v0 }
 0x1e1   :  { %v673_v47 = vpop.permute.xlu1 %672 }
 0x1e2   :  { %1561 = vmatmul.mubr.msk.bf16.vlgmr.msra.gmra.mxu0 %vm156_vm2, %v1934_v23  ;;  %v679_v48 = vsel %vm677_vm3, %v673_v47, 0 }
 0x1e3   :  { %1571 = vmatpush3.bf16.xpose.msra.mxu0 %v406_v42  ;;  %1572 = vmatprep.mubr.msk.bf16.mxu0 %vm1831_vm0, %v1830_v0 }
 0x1e4   :  { %1582 = vmatprep.subr.bf16.mxu0 %v1830_v0 }
 0x1e6   :  { %1567 = vmatmul.mubr.msk.bf16.vlgmr.msra.gmra.mxu1 %vm156_vm2, %v1944_v27 }
 0x1e7   :  { %1577 = vmatpush3.bf16.xpose.msra.mxu1 %v455_v45  ;;  %1578 = vmatprep.mubr.msk.bf16.mxu1 %vm1831_vm0, %v1830_v0 }
 0x1e8   :  { %1588 = vmatprep.subr.bf16.mxu1 %v1830_v0 }
 0x1ea   :  { %1573 = vmatmul.mubr.msk.bf16.vlgmr.msra.gmra.mxu0 %vm156_vm2, %v1942_v26 }
 0x1eb   :  { %1583 = vmatpush3.bf16.xpose.msra.mxu0 %v504_v46  ;;  %1584 = vmatprep.mubr.msk.bf16.mxu0 %vm1831_vm0, %v1830_v0 }
 0x1ec   :  { %1594 = vmatprep.subr.bf16.mxu0 %v1830_v0 }
 0x1ee   :  { %1579 = vmatmul.mubr.msk.bf16.vlgmr.msra.gmra.mxu1 %vm156_vm2, %v1950_v30 }
 0x1ef   :  { %1589 = vmatpush3.bf16.msra.mxu1 %v679_v48  ;;  %1590 = vmatprep.mubr.msk.bf16.mxu1 %vm1831_vm0, %v1830_v0 }
 0x1f0   :  { %1600 = vmatprep.subr.bf16.mxu1 %v1830_v0 }
 0x1f2   :  { %1585 = vmatmul.mubr.msk.bf16.vlgmr.msra.gmra.mxu0 %vm156_vm2, %v1952_v31 }
 0x1f3   :  { %1596 = vmatprep.mubr.msk.bf16.mxu0 %vm1831_vm0, %v1830_v0 }
 0x231   :  { %v197_v49 = vpop.f32.mrf.mxu1 }
 0x232   :  { %v546_v51 = vmul.f32 0.35355338, %v197_v49 }
 0x233   :  { %v1544_v52 = vpop.f32.mrf.mxu1 }
 0x234   :  { %v2008_v53 = vadd.f32 %v1465_v50, %v546_v51 }
 0x235   :  { %v200_v54 = vpop.f32.mrf.mxu1 }
 0x236   :  { %v576_v55 = vsel %vm156_vm2, %v2008_v53, -inf }
 0x237   :  { %v1545_v56 = vpop.f32.mrf.mxu1  ;;  %577 = vmax.xlane.f32.xlu0 %v576_v55 }
 0x29a   :  { %v246_v57 = vpop.f32.mrf.mxu0 }
 0x29b   :  { %v547_v58 = vmul.f32 0.35355338, %v246_v57 }
 0x29c   :  { %v1550_v59 = vpop.f32.mrf.mxu0 }
 0x29d   :  { %v2012_v60 = vadd.f32 %v1465_v50, %v547_v58 }
 0x29e   :  { %v249_v61 = vpop.f32.mrf.mxu0  ;;  %v295_v62 = vpop.f32.mrf.mxu1 }
 0x29f   :  { %v548_v63 = vmul.f32 0.35355338, %v295_v62  ;;  %v579_v1 = vsel %vm156_vm2, %v2012_v60, -inf }
 0x2a0   :  { %v1556_v2 = vpop.f32.mrf.mxu1  ;;  %580 = vmax.xlane.f32.xlu1 %v579_v1  ;;  %v1551_v5 = vpop.f32.mrf.mxu0 }
 0x2a1   :  { %v570_v6 = vadd.f32 %v1465_v50, %v548_v63 }
 0x2a2   :  { %v298_v8 = vpop.f32.mrf.mxu1  ;;  %v344_v10 = vpop.f32.mrf.mxu0 }
 0x2a3   :  { %v549_v11 = vmul.f32 0.35355338, %v344_v10  ;;  %v582_v12 = vsel %vm156_vm2, %v570_v6, -inf }
 0x2a4   :  { %v1557_v13 = vpop.f32.mrf.mxu1  ;;  %583 = vmax.xlane.f32.xlu0 %v582_v12  ;;  %v1562_v14 = vpop.f32.mrf.mxu0 }
 0x2a5   :  { %v571_v15 = vadd.f32 %v1465_v50, %v549_v11 }
 0x2a6   :  { %v347_v16 = vpop.f32.mrf.mxu0  ;;  %v393_v17 = vpop.f32.mrf.mxu1 }
 0x2a7   :  { %v550_v19 = vmul.f32 0.35355338, %v393_v17  ;;  %v585_v21 = vsel %vm156_vm2, %v571_v15, -inf }
 0x2a8   :  { %v1568_v22 = vpop.f32.mrf.mxu1  ;;  %586 = vmax.xlane.f32.xlu0 %v585_v21  ;;  %v1563_v25 = vpop.f32.mrf.mxu0 }
 0x2a9   :  { %v2018_v28 = vadd.f32 %v1466_v18, %v550_v19 }
 0x2aa   :  { %v396_v29 = vpop.f32.mrf.mxu1  ;;  %v442_v32 = vpop.f32.mrf.mxu0 }
 0x2ab   :  { %v551_v33 = vmul.f32 0.35355338, %v442_v32  ;;  %v588_v34 = vsel %vm156_vm2, %v2018_v28, -inf }
 0x2ac   :  { %v1569_v35 = vpop.f32.mrf.mxu1  ;;  %589 = vmax.xlane.f32.xlu1 %v588_v34  ;;  %v1574_v36 = vpop.f32.mrf.mxu0 }
 0x2ad   :  { %v2022_v37 = vadd.f32 %v1466_v18, %v551_v33 }
 0x2ae   :  { %v445_v38 = vpop.f32.mrf.mxu0  ;;  %v491_v39 = vpop.f32.mrf.mxu1 }
 0x2af   :  { %v552_v40 = vmul.f32 0.35355338, %v491_v39  ;;  %v591_v41 = vsel %vm156_vm2, %v2022_v37, -inf }
 0x2b0   :  { %v1580_v42 = vpop.f32.mrf.mxu1  ;;  %592 = vmax.xlane.f32.xlu0 %v591_v41  ;;  %v1575_v43 = vpop.f32.mrf.mxu0 }
 0x2b1   :  { %v574_v44 = vadd.f32 %v1466_v18, %v552_v40 }
 0x2b2   :  { %v494_v45 = vpop.f32.mrf.mxu1  ;;  %v540_v46 = vpop.f32.mrf.mxu0 }
 0x2b3   :  { %v553_v47 = vmul.f32 0.35355338, %v540_v46  ;;  %v594_v48 = vsel %vm156_vm2, %v574_v44, -inf }
 0x2b4   :  { %v1581_v49 = vpop.f32.mrf.mxu1  ;;  %595 = vmax.xlane.f32.xlu1 %v594_v48  ;;  %v1586_v50 = vpop.f32.mrf.mxu0 }
 0x2b5   :  { %v575_v51 = vadd.f32 %v1466_v18, %v553_v47 }
 0x2b6   :  { %v543_v52 = vpop.f32.mrf.mxu0 }
 0x2b7   :  { %v597_v54 = vsel %vm156_vm2, %v575_v51, -inf }
 0x2b8   :  { %598 = vmax.xlane.f32.xlu0 %v597_v54  ;;  %v1587_v55 = vpop.f32.mrf.mxu0 }
 0x2c0   :  { %v578_v56 = vpop.xlane.xlu0 %577 }
 0x2c1   :  { %v600_v57 = vsub.f32 %v2008_v53, %v578_v56 }
 0x2c3   :  { %v608_v58 = vmul.f32 1.442695, %v600_v57 }
 0x2c5   :  { %769 = vrot.lane.b32.xlu1 %v1936_v24, %s1828_s11  ;;  %1706 = vpow2.f32 %v608_v58 }
 0x2c9   :  { %817 = vrot.lane.b32.xlu1 %v1934_v23, %s1828_s11 }
 0x2ce   :  { %721 = vrot.lane.b32.xlu0 %v1930_v20, %s1828_s11 }
 0x2d2   :  { %v2035_v59 = vpop.eup %1706 }
 0x2d3   :  { %v624_v61 = vsel %vm156_vm2, %v2035_v59, 0.0 }
 0x2ed   :  { %625 = vadd.xlane.f32.xlu1 %v624_v61 }
 0x329   :  { %v581_v62 = vpop.xlane.xlu1 %580 }
 0x32a   :  { %v601_v24 = vsub.f32 %v2012_v60, %v581_v62 }
 0x32c   :  { %v610_v63 = vmul.f32 1.442695, %v601_v24 }
 0x32d   :  { %v584_v1 = vpop.xlane.xlu0 %583 }
 0x32e   :  { %1708 = vpow2.f32 %v610_v63  ;;  %v602_v23 = vsub.f32 %v570_v6, %v584_v1 }
 0x330   :  { %v612_v2 = vmul.f32 1.442695, %v602_v23 }
 0x331   :  { %v587_v20 = vpop.xlane.xlu0 %586 }
 0x332   :  { %1710 = vpow2.f32 %v612_v2  ;;  %v603_v5 = vsub.f32 %v571_v15, %v587_v20 }
 0x334   :  { %v614_v53 = vmul.f32 1.442695, %v603_v5 }
 0x335   :  { %v590_v17 = vpop.xlane.xlu1 %589 }
 0x336   :  { %1712 = vpow2.f32 %v614_v53  ;;  %v604_v18 = vsub.f32 %v2018_v28, %v590_v17 }
 0x338   :  { %v616_v22 = vmul.f32 1.442695, %v604_v18 }
 0x339   :  { %v593_v11 = vpop.xlane.xlu0 %592 }
 0x33a   :  { %v605_v21 = vsub.f32 %v2022_v37, %v593_v11  ;;  %1714 = vpow2.f32 %v616_v22 }
 0x33b   :  { %v2040_v8 = vpop.eup %1708 }
 0x33c   :  { %v627_v10 = vsel %vm156_vm2, %v2040_v8, 0.0  ;;  %v618_v29 = vmul.f32 1.442695, %v605_v21 }
 0x33d   :  { %628 = vadd.xlane.f32.xlu0 %v627_v10  ;;  %v596_v19 = vpop.xlane.xlu1 %595 }
 0x33e   :  { %v606_v25 = vsub.f32 %v574_v44, %v596_v19  ;;  %1716 = vpow2.f32 %v618_v29 }
 0x33f   :  { %v2044_v12 = vpop.eup %1710 }
 0x340   :  { %v630_v60 = vsel %vm156_vm2, %v2044_v12, 0.0  ;;  %v620_v32 = vmul.f32 1.442695, %v606_v25 }
 0x341   :  { %631 = vadd.xlane.f32.xlu1 %v630_v60  ;;  %v599_v6 = vpop.xlane.xlu0 %598  ;;  %v770_v35 = vpop.permute.xlu1 %769 }
 0x342   :  { %v607_v33 = vsub.f32 %v575_v51, %v599_v6  ;;  %1718 = vpow2.f32 %v620_v32  ;;  %v775_v46 = vsel %vm677_vm3, %v770_v35, 0 }
 0x343   :  { %v2048_v13 = vpop.eup %1712 }
 0x344   :  { %v633_v14 = vsel %vm156_vm2, %v2048_v13, 0.0  ;;  %v622_v34 = vmul.f32 1.442695, %v607_v33 }
 0x345   :  { %634 = vadd.xlane.f32.xlu0 %v633_v14  ;;  %v722_v15 = vpop.permute.xlu0 %721  ;;  %v818_v36 = vpop.permute.xlu1 %817 }
 0x346   :  { %v727_v16 = vsel %vm677_vm3, %v722_v15, 0  ;;  %1720 = vpow2.f32 %v622_v34  ;;  %v823_v55 = vsel %vm677_vm3, %v818_v36, 0 }
 0x347   :  { %1595 = vmatpush3.bf16.msra.mxu0 %v727_v16 }
 0x348   :  { %1606 = vmatprep.subr.bf16.mxu0 %v1830_v0 }
 0x352   :  { %913 = vrot.lane.b32.xlu1 %v1942_v26, %s1828_s11  ;;  %v2060_v26 = vpop.eup %1714 }
 0x353   :  { %v636_v28 = vsel %vm156_vm2, %v2060_v26, 0.0 }
 0x35b   :  { %865 = vrot.lane.b32.xlu0 %v1944_v27, %s1828_s11  ;;  %v2062_v27 = vpop.eup %1716 }
 0x35c   :  { %v2066_v37 = vpop.eup %1718  ;;  %v639_v40 = vsel %vm156_vm2, %v2062_v27, 0.0 }
 0x35d   :  { %v642_v39 = vsel %vm156_vm2, %v2066_v37, 0.0  ;;  %v2072_v41 = vpop.eup %1720 }
 0x35e   :  { %v645_v42 = vsel %vm156_vm2, %v2072_v41, 0.0 }
 0x376   :  { %637 = vadd.xlane.f32.xlu1 %v636_v28  ;;  %v626_v38 = vpop.xlane.xlu1 %625 }
 0x377   :  { %1722 = vrcp.f32 %v626_v38 }
 0x37a   :  { %643 = vadd.xlane.f32.xlu1 %v642_v39  ;;  %640 = vadd.xlane.f32.xlu0 %v639_v40 }
 0x37e   :  { %646 = vadd.xlane.f32.xlu0 %v645_v42  ;;  %v1698_v42 = vld [vmem:[%s2199_s3 + $0x8] sm:$0xff]  }
 0x384   :  { %v1723_v43 = vpop.eup %1722 }
 0x385   :  { %v656_v44 = vmul.f32 %v1723_v43, %v2035_v59 }
 0x387   :  { %v664_v45 = vpack.c.bf16 %v656_v44, %v656_v44 }
 0x389   :  { %1591 = vmatmul.mubr.msk.bf16.vlgmr.msra.gmra.mxu1 %vm156_vm2, %v664_v45  ;;  %v1699_v45 = vld [vmem:[%s2199_s3] sm:$0xff]   ;;  %s1837_s3 = smov 24  }
 0x38a   :  { %1601 = vmatpush3.bf16.msra.mxu1 %v775_v46  ;;  %1602 = vmatprep.mubr.msk.bf16.mxu1 %vm1831_vm0, %v1830_v0 }
 0x38b   :  { %1009 = vrot.lane.b32.xlu1 %v1952_v31, %s1828_s11  ;;  %1612 = vmatprep.subr.bf16.mxu1 %v1830_v0 }
 0x394   :  { %961 = vrot.lane.b32.xlu0 %v1950_v30, %s1828_s11 }
 0x3c6   :  { %v629_v47 = vpop.xlane.xlu0 %628 }
 0x3c7   :  { %1724 = vrcp.f32 %v629_v47 }
 0x3ca   :  { %v632_v48 = vpop.xlane.xlu1 %631 }
 0x3cb   :  { %1726 = vrcp.f32 %v632_v48 }
 0x3ce   :  { %v635_v49 = vpop.xlane.xlu0 %634  ;;  %v914_v61 = vpop.permute.xlu1 %913 }
 0x3cf   :  { %1728 = vrcp.f32 %v635_v49  ;;  %v919_v24 = vsel %vm677_vm3, %v914_v61, 0 }
 0x3d2   :  { %v866_v56 = vpop.permute.xlu0 %865 }
 0x3d3   :  { %v871_v58 = vsel %vm677_vm3, %v866_v56, 0 }
 0x3d4   :  { %v1725_v50 = vpop.eup %1724 }
 0x3d5   :  { %v657_v51 = vmul.f32 %v1725_v50, %v2040_v8 }
 0x3d7   :  { %v665_v52 = vpack.c.bf16 %v657_v51, %v657_v51 }
 0x3d8   :  { %v1727_v54 = vpop.eup %1726 }
 0x3d9   :  { %1597 = vmatmul.mubr.msk.bf16.vlgmr.msra.gmra.mxu0 %vm156_vm2, %v665_v52  ;;  %v658_v31 = vmul.f32 %v1727_v54, %v2044_v12 }
 0x3da   :  { %1607 = vmatpush3.bf16.msra.mxu0 %v823_v55  ;;  %1608 = vmatprep.mubr.msk.bf16.mxu0 %vm1831_vm0, %v1830_v0 }
 0x3db   :  { %v666_v30 = vpack.c.bf16 %v658_v31, %v658_v31  ;;  %1618 = vmatprep.subr.bf16.mxu0 %v1830_v0 }
 0x3dc   :  { %v1729_v57 = vpop.eup %1728 }
 0x3dd   :  { %1603 = vmatmul.mubr.msk.bf16.vlgmr.msra.gmra.mxu1 %vm156_vm2, %v666_v30  ;;  %v659_v59 = vmul.f32 %v1729_v57, %v2048_v13 }
 0x3de   :  { %1613 = vmatpush3.bf16.msra.mxu1 %v871_v58  ;;  %1614 = vmatprep.mubr.msk.bf16.mxu1 %vm1831_vm0, %v1830_v0 }
 0x3df   :  { %v667_v62 = vpack.c.bf16 %v659_v59, %v659_v59  ;;  %1624 = vmatprep.subr.bf16.mxu1 %v1830_v0 }
 0x3e1   :  { %1609 = vmatmul.mubr.msk.bf16.vlgmr.msra.gmra.mxu0 %vm156_vm2, %v667_v62 }
 0x3e2   :  { %1619 = vmatpush3.bf16.msra.mxu0 %v919_v24  ;;  %1620 = vmatprep.mubr.msk.bf16.mxu0 %vm1831_vm0, %v1830_v0 }
 0x3e3   :  { %1630 = vmatprep.subr.bf16.mxu0 %v1830_v0 }
 0x3ff   :  { %v638_v63 = vpop.xlane.xlu1 %637 }
 0x400   :  { %1730 = vrcp.f32 %v638_v63 }
 0x403   :  { %v644_v1 = vpop.xlane.xlu1 %643  ;;  %v641_v23 = vpop.xlane.xlu0 %640 }
 0x404   :  { %1732 = vrcp.f32 %v644_v1 }
 0x405   :  { %1734 = vrcp.f32 %v641_v23 }
 0x407   :  { %v647_v2 = vpop.xlane.xlu0 %646  ;;  %v1010_v6 = vpop.permute.xlu1 %1009 }
 0x408   :  { %1736 = vrcp.f32 %v647_v2  ;;  %v1015_v16 = vsel %vm677_vm3, %v1010_v6, 0 }
 0x40b   :  { %v962_v53 = vpop.permute.xlu0 %961 }
 0x40c   :  { %v967_v12 = vsel %vm677_vm3, %v962_v53, 0 }
 0x40d   :  { %v1731_v20 = vpop.eup %1730 }
 0x40e   :  { %v660_v5 = vmul.f32 %v1731_v20, %v2060_v26 }
 0x410   :  { %v668_v8 = vpack.c.bf16 %v660_v5, %v660_v5 }
 0x411   :  { %v1733_v10 = vpop.eup %1732 }
 0x412   :  { %v1735_v11 = vpop.eup %1734  ;;  %1615 = vmatmul.mubr.msk.bf16.vlgmr.msra.gmra.mxu1 %vm156_vm2, %v668_v8  ;;  %v662_v13 = vmul.f32 %v1733_v10, %v2066_v37 }
 0x413   :  { %1625 = vmatpush3.bf16.msra.mxu1 %v967_v12  ;;  %v661_v60 = vmul.f32 %v1735_v11, %v2062_v27  ;;  %1626 = vmatprep.mubr.msk.bf16.mxu1 %vm1831_vm0, %v1830_v0 }
 0x414   :  { %1636 = vmatprep.subr.bf16.mxu1 %v1830_v0  ;;  %v670_v17 = vpack.c.bf16 %v662_v13, %v662_v13 }
 0x415   :  { %v669_v14 = vpack.c.bf16 %v661_v60, %v661_v60  ;;  %v1737_v15 = vpop.eup %1736 }
 0x416   :  { %v663_v18 = vmul.f32 %v1737_v15, %v2072_v41 }
 0x417   :  { %1621 = vmatmul.mubr.msk.bf16.vlgmr.msra.gmra.mxu0 %vm156_vm2, %v669_v14  ;;  %v1096_v14 = vsub.s32 1, %v1920_v7 }
 0x418   :  { %1631 = vmatpush3.bf16.msra.mxu0 %v1015_v16  ;;  %1632 = vmatprep.mubr.msk.bf16.mxu0 %vm1831_vm0, %v1830_v0  ;;  %v671_v19 = vpack.c.bf16 %v663_v18, %v663_v18 }
 0x419   :  { %1644 = vmatprep.subr.bf16.mxu0 %v1830_v0  ;;  %v2141_v15 = vrot.slane %v1926_v9, %v1096_v14 }
 0x41a   :  { %1627 = vmatmul.mubr.msk.bf16.vlgmr.msra.gmra.mxu1 %vm156_vm2, %v670_v17 }
 0x41b   :  { %1640 = vmatprep.mubr.msk.bf16.mxu1 %vm1831_vm0, %v1830_v0  ;;  %1637 = vmatpush3.bf16.msra.mxu1 %v1698_v42 }
 0x41c   :  { %1638 = vmatprep.subr.bf16.mxu1 %v1830_v0 }
 0x41f   :  { %1633 = vmatmul.mubr.msk.bf16.vlgmr.msra.gmra.mxu0 %vm156_vm2, %v671_v19  ;;  %1639 = vmatpush3.bf16.msra.mxu1 %v1699_v45 }
 0x420   :  { %1648 = vmatprep.mubr.msk.bf16.mxu0 %vm1831_vm0, %v1830_v0  ;;  %1652 = vmatprep.subr.bf16.mxu1 %v1830_v0 }
 0x449   :  { %v715_v21 = vpop.f32.mrf.mxu1 }
 0x44b   :  { %v1592_v22 = vpop.f32.mrf.mxu1 }
 0x44d   :  { %v718_v25 = vpop.f32.mrf.mxu1 }
 0x44f   :  { %v1593_v29 = vpop.f32.mrf.mxu1 }
 0x499   :  { %v763_v32 = vpop.f32.mrf.mxu0 }
 0x49b   :  { %v1598_v33 = vpop.f32.mrf.mxu0 }
 0x49d   :  { %v766_v34 = vpop.f32.mrf.mxu0  ;;  %v811_v35 = vpop.f32.mrf.mxu1 }
 0x49f   :  { %v1599_v26 = vpop.f32.mrf.mxu0  ;;  %v1604_v36 = vpop.f32.mrf.mxu1 }
 0x4a1   :  { %v814_v27 = vpop.f32.mrf.mxu1  ;;  %v859_v28 = vpop.f32.mrf.mxu0 }
 0x4a3   :  { %v1605_v37 = vpop.f32.mrf.mxu1  ;;  %v1610_v38 = vpop.f32.mrf.mxu0 }
 0x4a5   :  { %v862_v39 = vpop.f32.mrf.mxu0 }
 0x4a7   :  { %v1611_v40 = vpop.f32.mrf.mxu0 }
 0x4d2   :  { %v907_v41 = vpop.f32.mrf.mxu1 }
 0x4d4   :  { %v1616_v43 = vpop.f32.mrf.mxu1 }
 0x4d6   :  { %v910_v44 = vpop.f32.mrf.mxu1 }
 0x4d7   :  { %v955_v46 = vpop.f32.mrf.mxu0 }
 0x4d8   :  { %v1681_v47 = vpack.i.bf16 %v955_v46, %v763_v32  ;;  %v1617_v48 = vpop.f32.mrf.mxu1 }
 0x4d9   :  { %v1622_v49 = vpop.f32.mrf.mxu0 }
 0x4da   :  { %1682 = vrot.lane.b32.xlu0 %v1681_v47, %s1836_s29  ;;  %v1003_v50 = vpop.f32.mrf.mxu1 }
 0x4db   :  { %v958_v51 = vpop.f32.mrf.mxu0  ;;  %v1686_v52 = vpack.i.bf16 %v1003_v50, %v811_v35 }
 0x4dc   :  { %v1628_v54 = vpop.f32.mrf.mxu1 }
 0x4dd   :  { %v1623_v55 = vpop.f32.mrf.mxu0  ;;  %1687 = vrot.lane.b32.xlu1 %v1686_v52, %s1825_s27  ;;  %s1838_s27 = smov 32  }
 0x4de   :  { %v1006_v31 = vpop.f32.mrf.mxu1 }
 0x4df   :  { %v1051_v56 = vpop.f32.mrf.mxu0 }
 0x4e0   :  { %v1691_v30 = vpack.i.bf16 %v1051_v56, %v859_v28  ;;  %v1629_v57 = vpop.f32.mrf.mxu1 }
 0x4e1   :  { %v1634_v58 = vpop.f32.mrf.mxu0 }
 0x4e2   :  { %1692 = vrot.lane.b32.xlu0 %v1691_v30, %s1837_s3  ;;  %v1220_v58 = vsub.s32 2, %v1920_v7 }
 0x4e3   :  { %v1054_v59 = vpop.f32.mrf.mxu0 }
 0x4e4   :  { %v1700_v59 = vld [vmem:[#allocation5 + $0x8] sm:$0xff]  }
 0x4e5   :  { %v1635_v61 = vpop.f32.mrf.mxu0  ;;  %1645 = vmatpush3.bf16.msra.mxu0 %v1700_v59 }
 0x4e6   :  { %v2153_v61 = vrot.slane %v1926_v9, %v1220_v58  ;;  %1646 = vmatprep.subr.bf16.mxu0 %v1830_v0 }
 0x54c   :  { %v1683_v62 = vpop.permute.xlu0 %1682 }
 0x54d   :  { %v1685_v63 = vunpack.i.h.bf16 %v1683_v62  ;;  %v1684_v1 = vunpack.i.l.bf16 %v1683_v62  ;;  %v1701_v62 = vld [vmem:[#allocation5] sm:$0xff]  }
 0x54e   :  { %1647 = vmatpush3.bf16.msra.mxu0 %v1701_v62 }
 0x54f   :  { %v1688_v24 = vpop.permute.xlu1 %1687  ;;  %v1082_v5 = vsel %vm156_vm2, %v907_v41, %v1685_v63  ;;  %v1081_v53 = vsel %vm156_vm2, %v715_v21, %v1684_v1 }
 0x550   :  { %v1690_v23 = vunpack.i.h.bf16 %v1688_v24  ;;  %v1689_v2 = vunpack.i.l.bf16 %v1688_v24 }
 0x552   :  { %v1084_v11 = vsel %vm1083_vm4, %v1081_v53, %v1689_v2  ;;  %v1085_v12 = vsel %vm1083_vm4, %v1082_v5, %v1690_v23  ;;  %v1702_v53 = vld [vmem:[%s2201_s5 + $0x18] sm:$0xff]  }
 0x554   :  { %v1693_v20 = vpop.permute.xlu0 %1692 }
 0x555   :  { %v1695_v8 = vunpack.i.h.bf16 %v1693_v20  ;;  %v1694_v10 = vunpack.i.l.bf16 %v1693_v20 }
 0x557   :  { %v1088_v60 = vsel %vm1086_vm5, %v1085_v12, %v1695_v8  ;;  %v1087_v6 = vsel %vm1086_vm5, %v1084_v11, %v1694_v10  ;;  %v1703_v8 = vld [vmem:[%s2201_s5 + $0x10] sm:$0xff]   ;;  %v1704_v10 = vld [vmem:[%s2201_s5 + $0x8] sm:$0xff]   ;;  %v1705_v11 = vld [vmem:[%s2201_s5] sm:$0xff]   ;;  %s1839_s5 = smov [#allocation7]  }
 0x558   :  { %v1089_v13 = vpack.c.bf16 %v1088_v60, %v1087_v6  ;;  %s1441_s1 = sshll.u32 %s1839_s5, 4  ;;  %s1442_s1 = int_to_ptr.vmem [resolvable:$true] %s1441_s1 }
 0x559   :  { %s1798_s15 = scalar_lea.vmem %s1442_s1, 256  ;;  %p1803_p11 = scmp.lt.s32.totalorder %s1442_s1, %s1442_s1 }
 0x55a   :  { %1641 = vmatmul.mubr.msk.bf16.vlgmr.msra.gmra.mxu1 %vm80_vm1, %v1089_v13  ;;  %p1799_p10 = scmp.ne.s32.totalorder %s1442_s1, %s1798_s15  ;;  %p1804_p12 = scmp.lt.s32.totalorder %s1798_s15, %s1798_s15 }
 0x55b   :  { %1660 = vmatprep.mubr.msk.bf16.mxu1 %vm1831_vm0, %v1830_v0  ;;  %1653 = vmatpush3.bf16.msra.mxu1 %v1702_v53 }
 0x55c   :  { %1654 = vmatprep.subr.bf16.mxu1 %v1830_v0  ;;  %p1805_p13 = por %p1804_p12, %p1803_p11 }
 0x55e   :  { %p1806_p0 = pnand %p1805_p13, %p1799_p10 }
 0x55f   :  { %1655 = vmatpush3.bf16.msra.mxu1 %v1703_v8 }
 0x560   :  { %1656 = vmatprep.subr.bf16.mxu1 %v1830_v0 }
 0x563   :  { %1657 = vmatpush3.bf16.msra.mxu1 %v1704_v10 }
 0x564   :  { %1658 = vmatprep.subr.bf16.mxu1 %v1830_v0 }
 0x567   :  { %1659 = vmatpush3.bf16.msra.mxu1 %v1705_v11 }
 0x61a   :  { %v1147_v16 = vpop.f32.mrf.mxu1 }
 0x61b   :  { %v1148_v17 = vadd.f32 %v1147_v16, %v2141_v15 }
 0x61c   :  { %v1642_v18 = vpop.f32.mrf.mxu1 }
 0x61d   :  { %v1154_v19 = vadd.f32 %v1148_v17, %v1906_v3 }
 0x61e   :  { %v1150_v21 = vpop.f32.mrf.mxu1 }
 0x61f   :  { %v1151_v22 = vadd.f32 %v1150_v21, %v2141_v15  ;;  %v1156_v25 = vsel %vm80_vm1, %v1154_v19, 0.0 }
 0x620   :  { %1157 = vadd.xlane.f32.xlu1 %v1156_v25  ;;  %v1643_v29 = vpop.f32.mrf.mxu1 }
 0x621   :  { %v1155_v32 = vadd.f32 %v1151_v22, %v1911_v4 }
 0x623   :  { %v1159_v33 = vsel %vm80_vm1, %v1155_v32, 0.0 }
 0x624   :  { %1160 = vadd.xlane.f32.xlu0 %v1159_v33 }
 0x6a9   :  { %v1158_v34 = vpop.xlane.xlu1 %1157 }
 0x6aa   :  { %v1163_v35 = vmul.f32 0.03125, %v1158_v34 }
 0x6ac   :  { %v1165_v26 = vsub.f32 %v1154_v19, %v1163_v35 }
 0x6ad   :  { %v1161_v36 = vpop.xlane.xlu0 %1160 }
 0x6ae   :  { %v1164_v27 = vmul.f32 0.03125, %v1161_v36  ;;  %v1167_v28 = vmul.f32 %v1165_v26, %v1165_v26 }
 0x6b0   :  { %v1166_v37 = vsub.f32 %v1155_v32, %v1164_v27  ;;  %v1169_v3 = vsel %vm80_vm1, %v1167_v28, 0.0 }
 0x6b1   :  { %1170 = vadd.xlane.f32.xlu0 %v1169_v3 }
 0x6b2   :  { %v1168_v38 = vmul.f32 %v1166_v37, %v1166_v37 }
 0x6b4   :  { %v1172_v39 = vsel %vm80_vm1, %v1168_v38, 0.0 }
 0x6b5   :  { %1173 = vadd.xlane.f32.xlu1 %v1172_v39 }
 0x73a   :  { %v1171_v40 = vpop.xlane.xlu0 %1170 }
 0x73b   :  { %v1175_v41 = vmul.f32 0.03125, %v1171_v40 }
 0x73d   :  { %v1177_v4 = vadd.f32 1e-12, %v1175_v41 }
 0x73e   :  { %v1174_v42 = vpop.xlane.xlu1 %1173 }
 0x73f   :  { %1738 = vrsqrt.f32 %v1177_v4  ;;  %v1176_v43 = vmul.f32 0.03125, %v1174_v42  ;;  %vm1181_vm6 = vcmp.eq.f32.partialorder %v1177_v4, inf  ;;  %v1184_v47 = vand.u32 2147483648, %v1177_v4 }
 0x740   :  { %vm1183_vm7 = vcmp.eq.f32.partialorder %v1177_v4, 0.0 }
 0x741   :  { %v1178_v44 = vadd.f32 1e-12, %v1176_v43 }
 0x743   :  { %1740 = vrsqrt.f32 %v1178_v44  ;;  %vm1188_vm8 = vcmp.eq.f32.partialorder %v1178_v44, inf  ;;  %v1191_v52 = vand.u32 2147483648, %v1178_v44  ;;  %vm1190_vm9 = vcmp.eq.f32.partialorder %v1178_v44, 0.0 }
 0x74c   :  { %v1739_v45 = vpop.eup %1738 }
 0x74d   :  { %v1180_v46 = vmul.f32 %v1739_v45, %v1177_v4 }
 0x74f   :  { %v1182_v48 = vsel %vm1181_vm6, %v1177_v4, %v1180_v46 }
 0x750   :  { %v1185_v49 = vsel %vm1183_vm7, %v1184_v47, %v1182_v48  ;;  %v1741_v50 = vpop.eup %1740 }
 0x751   :  { %1742 = vrcp.f32 %v1185_v49  ;;  %v1187_v51 = vmul.f32 %v1741_v50, %v1178_v44 }
 0x753   :  { %v1189_v54 = vsel %vm1188_vm8, %v1178_v44, %v1187_v51 }
 0x754   :  { %v1192_v55 = vsel %vm1190_vm9, %v1191_v52, %v1189_v54 }
 0x755   :  { %1744 = vrcp.f32 %v1192_v55 }
 0x75e   :  { %v1743_v31 = vpop.eup %1742 }
 0x75f   :  { %v1194_v56 = vmul.f32 %v1743_v31, %v1165_v26 }
 0x761   :  { %1199 = vrot.lane.b32.xlu0 %v1194_v56, %s1838_s27 }
 0x762   :  { %v1745_v30 = vpop.eup %1744 }
 0x763   :  { %v1196_v57 = vmul.f32 %v1745_v30, %v1166_v37 }
 0x765   :  { %1201 = vrot.lane.b32.xlu1 %v1196_v57, %s1838_s27 }
 0x769   :  { %1208 = vrot.lane.b32.xlu1 %v2141_v15, %s1835_s6 }
 0x76d   :  { %1238 = vrot.lane.b32.xlu1 %v2153_v61, %s1828_s11 }
 0x7d3   :  { %v1200_v24 = vpop.permute.xlu0 %1199 }
 0x7d4   :  { %v1205_v7 = vmul.f32 %v1200_v24, %v2141_v15 }
 0x7d7   :  { %v1202_v63 = vpop.permute.xlu1 %1201 }
 0x7d8   :  { %v1206_v1 = vmul.f32 %v1202_v63, %v2141_v15 }
 0x7db   :  { %v1209_v23 = vpop.permute.xlu1 %1208 }
 0x7dc   :  { %v1211_v9 = vadd.f32 %v1209_v23, %v1205_v7  ;;  %v1212_v2 = vadd.f32 %v1209_v23, %v1206_v1 }
 0x7de   :  { %v1213_v20 = vpack.c.bf16 %v1212_v2, %v1211_v9  ;;  %1379 = vrot.lane.b32.xlu1 %v1211_v9, %s1835_s6 }
 0x7df   :  { %v1239_v12 = vpop.permute.xlu1 %1238 }
 0x7e0   :  { %1223 = vrot.lane.b32.xlu0 %v1213_v20, %s1835_s6 }
 0x7e4   :  { %1329 = vrot.lane.b32.xlu0 %v2141_v15, %s1838_s27 }
 0x7e8   :  { %1381 = vrot.lane.b32.xlu0 %v1212_v2, %s1835_s6 }
 0x850   :  { %v1380_v27 = vpop.permute.xlu1 %1379 }
 0x852   :  { %v1224_v5 = vpop.permute.xlu0 %1223 }
 0x853   :  { %1649 = vmatmul.mubr.msk.bf16.vlgmr.msra.gmra.mxu0 %vm80_vm1, %v1224_v5 }
 0x856   :  { %v1330_v35 = vpop.permute.xlu0 %1329 }
 0x85a   :  { %v1382_v40 = vpop.permute.xlu0 %1381 }
 0x913   :  { %v1278_v60 = vpop.f32.mrf.mxu0 }
 0x914   :  { %v1279_v6 = vadd.f32 %v1278_v60, %v1239_v12 }
 0x915   :  { %v1650_v13 = vpop.f32.mrf.mxu0 }
 0x916   :  { %v1288_v14 = vmul.f32 0.70710677, %v1279_v6  ;;  %v1285_v0 = vmul.f32 0.5, %v1279_v6 }
 0x917   :  { %v1281_v15 = vpop.f32.mrf.mxu0 }
 0x918   :  { %1746 = verf.f32 %v1288_v14  ;;  %v1282_v16 = vadd.f32 %v1281_v15, %v1239_v12 }
 0x919   :  { %v1651_v17 = vpop.f32.mrf.mxu0 }
 0x91a   :  { %v1289_v18 = vmul.f32 0.70710677, %v1282_v16  ;;  %v1286_v25 = vmul.f32 0.5, %v1282_v16 }
 0x91c   :  { %1748 = verf.f32 %v1289_v18 }
 0x925   :  { %v1747_v19 = vpop.eup %1746 }
 0x926   :  { %v1292_v21 = vadd.f32 1.0, %v1747_v19 }
 0x928   :  { %v1294_v32 = vmul.f32 %v1292_v21, %v1285_v0 }
 0x929   :  { %v1749_v22 = vpop.eup %1748 }
 0x92a   :  { %v1293_v29 = vadd.f32 1.0, %v1749_v22 }
 0x92c   :  { %v1295_v33 = vmul.f32 %v1293_v29, %v1286_v25 }
 0x92e   :  { %v1296_v34 = vpack.c.bf16 %v1295_v33, %v1294_v32 }
 0x930   :  { %1661 = vmatmul.mubr.msk.bf16.vlgmr.msra.gmra.mxu1 %vm1332_vm10, %v1296_v34 }
 0x9f0   :  { %v1370_v26 = vpop.f32.mrf.mxu1 }
 0x9f1   :  { %v1371_v36 = vadd.f32 %v1370_v26, %v1330_v35 }
 0x9f2   :  { %v1662_v28 = vpop.f32.mrf.mxu1 }
 0x9f3   :  { %v1385_v37 = vadd.f32 %v1380_v27, %v1371_v36 }
 0x9f4   :  { %v1373_v3 = vpop.f32.mrf.mxu1 }
 0x9f5   :  { %v1374_v38 = vadd.f32 %v1373_v3, %v1330_v35  ;;  %v1387_v39 = vsel %vm80_vm1, %v1385_v37, 0.0 }
 0x9f6   :  { %1388 = vadd.xlane.f32.xlu1 %v1387_v39  ;;  %v1663_v41 = vpop.f32.mrf.mxu1 }
 0x9f7   :  { %v1386_v4 = vadd.f32 %v1382_v40, %v1374_v38 }
 0x9f9   :  { %v1390_v42 = vsel %vm80_vm1, %v1386_v4, 0.0 }
 0x9fa   :  { %1391 = vadd.xlane.f32.xlu0 %v1390_v42 }
 0xa7f   :  { %v1389_v43 = vpop.xlane.xlu1 %1388 }
 0xa80   :  { %v1393_v44 = vmul.f32 0.03125, %v1389_v43 }
 0xa82   :  { %v1395_v45 = vsub.f32 %v1385_v37, %v1393_v44 }
 0xa83   :  { %v1392_v46 = vpop.xlane.xlu0 %1391 }
 0xa84   :  { %v1394_v47 = vmul.f32 0.03125, %v1392_v46  ;;  %v1397_v48 = vmul.f32 %v1395_v45, %v1395_v45 }
 0xa86   :  { %v1396_v49 = vsub.f32 %v1386_v4, %v1394_v47  ;;  %v1399_v50 = vsel %vm80_vm1, %v1397_v48, 0.0 }
 0xa87   :  { %1400 = vadd.xlane.f32.xlu0 %v1399_v50 }
 0xa88   :  { %v1398_v51 = vmul.f32 %v1396_v49, %v1396_v49 }
 0xa8a   :  { %v1402_v52 = vsel %vm80_vm1, %v1398_v51, 0.0 }
 0xa8b   :  { %1403 = vadd.xlane.f32.xlu1 %v1402_v52 }
 0xa9d   :  { %1429 = vrot.lane.b32.xlu0 %v2153_v61, %s1835_s6 }
 0xb10   :  { %v1401_v54 = vpop.xlane.xlu0 %1400 }
 0xb11   :  { %v1405_v55 = vmul.f32 0.03125, %v1401_v54 }
 0xb13   :  { %v1407_v31 = vadd.f32 1e-12, %v1405_v55 }
 0xb14   :  { %v1404_v56 = vpop.xlane.xlu1 %1403  ;;  %v1430_v53 = vpop.permute.xlu0 %1429 }
 0xb15   :  { %1750 = vrsqrt.f32 %v1407_v31  ;;  %v1406_v30 = vmul.f32 0.03125, %v1404_v56  ;;  %vm1411_vm11 = vcmp.eq.f32.partialorder %v1407_v31, inf  ;;  %v1414_v62 = vand.u32 2147483648, %v1407_v31 }
 0xb16   :  { %vm1413_vm12 = vcmp.eq.f32.partialorder %v1407_v31, 0.0 }
 0xb17   :  { %v1408_v57 = vadd.f32 1e-12, %v1406_v30 }
 0xb19   :  { %1752 = vrsqrt.f32 %v1408_v57  ;;  %vm1418_vm13 = vcmp.eq.f32.partialorder %v1408_v57, inf  ;;  %v1421_v23 = vand.u32 2147483648, %v1408_v57  ;;  %vm1420_vm14 = vcmp.eq.f32.partialorder %v1408_v57, 0.0 }
 0xb22   :  { %v1751_v58 = vpop.eup %1750 }
 0xb23   :  { %v1410_v59 = vmul.f32 %v1751_v58, %v1407_v31 }
 0xb25   :  { %v1412_v24 = vsel %vm1411_vm11, %v1407_v31, %v1410_v59 }
 0xb26   :  { %v1415_v63 = vsel %vm1413_vm12, %v1414_v62, %v1412_v24  ;;  %v1753_v7 = vpop.eup %1752 }
 0xb27   :  { %1754 = vrcp.f32 %v1415_v63  ;;  %v1417_v1 = vmul.f32 %v1753_v7, %v1408_v57 }
 0xb29   :  { %v1419_v9 = vsel %vm1418_vm13, %v1408_v57, %v1417_v1 }
 0xb2a   :  { %v1422_v2 = vsel %vm1420_vm14, %v1421_v23, %v1419_v9 }
 0xb2b   :  { %1756 = vrcp.f32 %v1422_v2 }
 0xb34   :  { %v1755_v20 = vpop.eup %1754 }
 0xb35   :  { %v1424_v5 = vmul.f32 %v1755_v20, %v1395_v45 }
 0xb37   :  { %v1427_v8 = vmul.f32 %v1424_v5, %v2153_v61 }
 0xb38   :  { %v1757_v10 = vpop.eup %1756 }
 0xb39   :  { %v1432_v11 = vadd.f32 %v1430_v53, %v1427_v8  ;;  %v1426_v12 = vmul.f32 %v1757_v10, %v1396_v49 }
 0xb3b   :  { %1434 = vst.msk [vmem:[#allocation7] sm:$0xff] %vm80_vm1, %v1432_v11  ;;  %v1428_v60 = vmul.f32 %v1426_v12, %v2153_v61 }
 0xb3d   :  { %v1433_v6 = vadd.f32 %v1430_v53, %v1428_v60 }
 0xb3f   :  { %1435 = vst.msk [vmem:[#allocation7 + $0x8] sm:$0xff] %vm80_vm1, %v1433_v6 }
 0xb40   :  { %1809 = shalt.err (!%p1806_p0)
}
 0xb41   :  { %s1840_s4 = smov 128  }
 0xb42   :  { %1447 = dma.vmem_to_hbm [thread:$0]  %s1442_s1, 256, %s2203_s7, [#allocation4], %s1840_s4, %s1840_s4, %s1836_s29  }
 0xb43   :  { %1822 = dma.done.wait [#allocation4], 256  }
 0xb44   :  { %1823 = vsyncadd [#allocation4], 4294967040 }
 0xb45   :  { %1451 = vsyncpa [#allocation3], 1 }
 0xb46   :  { %1452 = vsyncpa [#allocation6], 1 }
 0xb47   :  { %1453 = vsyncpa [#allocation4], 1 }

</bundles_post_ra>
